<compile_context>
chip_gen: v7x
topology: tpu7x:2x2x1
jax: 0.10.0
libtpu: 0.0.40
codegen_flags: <defaults>
</compile_context>

<pallas_src>
import functools

import jax
import jax.numpy as jnp
from jax import lax
from jax.experimental import pallas as pl
from jax.experimental.pallas import tpu as pltpu

_BN_EPS = 1e-5
_LANE = 128
_SUBLANE = 8


def _round_up(x, m):
    return ((x + m - 1) // m) * m


def _pad2d(a, rows, cols):
    return jnp.pad(a, ((0, rows - a.shape[0]), (0, cols - a.shape[1])))


def _nbytes(shape, dtype):
    n = 1
    for s in shape:
        n *= int(s)
    return n * jnp.dtype(dtype).itemsize


# ----------------------------------------------------------------------------
# Kernels
# ----------------------------------------------------------------------------
def _fused_mlp_kernel(*refs, num_hidden, n_real):
    """Fused forward: [Linear -> BN(train) -> ReLU] * num_hidden -> Linear.

    refs layout:
      refs[0]                      : x              [Np, Din_p]
      refs[1+3l : 4+3l]            : W_l, gamma_l, beta_l   (hidden layer l)
      refs[-3], refs[-2]           : W_out, b_out
      refs[-1]                     : output         [Np, Dout_p]
    """
    x_ref = refs[0]
    w_out_ref = refs[-3]
    b_out_ref = refs[-2]
    o_ref = refs[-1]

    h = x_ref[...]
    n_pad = h.shape[0]
    inv_n = jnp.float32(1.0 / n_real)

    for l in range(num_hidden):
        w_ref = refs[1 + 3 * l]
        gamma_ref = refs[2 + 3 * l]
        beta_ref = refs[3 + 3 * l]

        # Hidden-layer bias is omitted: BN subtracts the batch mean, which
        # cancels any constant per-feature offset exactly.
        y = jnp.dot(h, w_ref[...], preferred_element_type=jnp.float32)

        # One-pass BatchNorm1d (training-mode) statistics.  Zero-padded batch
        # rows of `h` give all-zero rows of `y` (no bias), so plain column sums
        # divided by the true batch size are exact.
        mean = jnp.sum(y, axis=0, keepdims=True) * inv_n            # [1, H]
        mean_sq = jnp.sum(y * y, axis=0, keepdims=True) * inv_n     # [1, H]
        var = jnp.maximum(mean_sq - mean * mean, 0.0)
        scale = gamma_ref[...] * lax.rsqrt(var + _BN_EPS)           # EUP rsqrt
        h = jnp.maximum((y - mean) * scale + beta_ref[...], 0.0)

        if n_real != n_pad:
            # Re-zero padded batch rows so the next layer's stats stay exact.
            row_ids = lax.broadcasted_iota(jnp.int32, h.shape, 0)
            h = jnp.where(row_ids < n_real, h, 0.0)

    out = jnp.dot(h, w_out_ref[...], preferred_element_type=jnp.float32)
    o_ref[...] = out + b_out_ref[...]


def _linear_kernel(x_ref, w_ref, b_ref, o_ref):
    """Single-layer model: y = x @ W + b."""
    y = jnp.dot(x_ref[...], w_ref[...], preferred_element_type=jnp.float32)
    o_ref[...] = y + b_ref[...]


# ----------------------------------------------------------------------------
# pallas_call wrapper (single invocation; everything lives in VMEM)
# ----------------------------------------------------------------------------
def _call(kernel, inputs, out_shape, flops, transcendentals):
    bytes_accessed = sum(_nbytes(a.shape, a.dtype) for a in inputs)
    bytes_accessed += _nbytes(out_shape.shape, out_shape.dtype)
    return pl.pallas_call(
        kernel,
        out_shape=out_shape,
        in_specs=[pl.BlockSpec(memory_space=pltpu.MemorySpace.VMEM)] * len(inputs),
        out_specs=pl.BlockSpec(memory_space=pltpu.MemorySpace.VMEM),
        compiler_params=pltpu.CompilerParams(vmem_limit_bytes=32 * 1024 * 1024),
        cost_estimate=pl.CostEstimate(
            flops=flops,
            transcendentals=transcendentals,
            bytes_accessed=bytes_accessed,
        ),
    )(*inputs)


# ----------------------------------------------------------------------------
# MLP module (parameter setup in plain JAX; compute in one fused Pallas kernel)
# ----------------------------------------------------------------------------
class MLP:
    def __init__(self, num_layers, input_dim, hidden_dim, output_dim, key):
        if num_layers < 1:
            raise ValueError("number of layers should be positive!")
        self.num_layers = num_layers
        self.linear_or_not = num_layers == 1
        self.input_dim = input_dim
        self.hidden_dim = hidden_dim
        self.output_dim = output_dim

        # Lane-dense padded feature dims.
        self._in_p = _round_up(input_dim, _LANE)
        self._hid_p = _round_up(hidden_dim, _LANE)
        self._out_p = _round_up(output_dim, _LANE)

        def init_linear(k, d_in, d_out):
            # PyTorch nn.Linear default: U(-1/sqrt(fan_in), 1/sqrt(fan_in))
            kw, kb = jax.random.split(k)
            bound = 1.0 / float(d_in) ** 0.5
            w = jax.random.uniform(kw, (d_in, d_out), jnp.float32, -bound, bound)
            b = jax.random.uniform(kb, (1, d_out), jnp.float32, -bound, bound)
            return w, b

        # Unpadded parameters (used by the pure-JAX reference).
        self.linears = []
        self.bn_params = []
        if self.linear_or_not:
            self.linears.append(init_linear(key, input_dim, output_dim))
        else:
            keys = jax.random.split(key, num_layers)
            dims = [input_dim] + [hidden_dim] * (num_layers - 1) + [output_dim]
            for l in range(num_layers):
                self.linears.append(init_linear(keys[l], dims[l], dims[l + 1]))
            for _ in range(num_layers - 1):
                gamma = jnp.ones((1, hidden_dim), jnp.float32)   # BN weight init
                beta = jnp.zeros((1, hidden_dim), jnp.float32)   # BN bias init
                self.bn_params.append((gamma, beta))

        # Zero-padded (lane/sublane aligned) copies handed to the kernel.
        if self.linear_or_not:
            dims_p = [self._in_p, self._out_p]
        else:
            dims_p = [self._in_p] + [self._hid_p] * (num_layers - 1) + [self._out_p]
        self._padded = []
        for l, (w, b) in enumerate(self.linears):
            w_p = _pad2d(w, dims_p[l], dims_p[l + 1])
            b_p = _pad2d(b, 1, dims_p[l + 1])
            self._padded.append((w_p, b_p))
        self._padded_bn = [
            (_pad2d(g, 1, self._hid_p), _pad2d(bt, 1, self._hid_p))
            for g, bt in self.bn_params
        ]

    def __call__(self, x):
        n = x.shape[0]
        n_pad = _round_up(max(n, 1), _SUBLANE)
        x_p = _pad2d(x.astype(jnp.float32), n_pad, self._in_p)

        if self.linear_or_not:
            w_p, b_p = self._padded[0]
            out_shape = jax.ShapeDtypeStruct((n_pad, self._out_p), jnp.float32)
            flops = 2 * n_pad * self._in_p * self._out_p
            out_p = _call(_linear_kernel, [x_p, w_p, b_p], out_shape, flops, 0)
            return out_p[:n, : self.output_dim]

        num_hidden = self.num_layers - 1
        inputs = [x_p]
        flops = 0
        d_prev = self._in_p
        for l in range(num_hidden):
            w_p, _ = self._padded[l]   # hidden bias dropped: BN cancels it
            g_p, beta_p = self._padded_bn[l]
            inputs.extend([w_p, g_p, beta_p])
            flops += 2 * n_pad * d_prev * self._hid_p
            d_prev = self._hid_p
        w_out_p, b_out_p = self._padded[-1]
        inputs.extend([w_out_p, b_out_p])
        flops += 2 * n_pad * d_prev * self._out_p
        transcendentals = num_hidden * self._hid_p   # one rsqrt per feature

        kernel = functools.partial(
            _fused_mlp_kernel, num_hidden=num_hidden, n_real=n
        )
        out_shape = jax.ShapeDtypeStruct((n_pad, self._out_p), jnp.float32)
        out_p = _call(kernel, inputs, out_shape, flops, transcendentals)
        return out_p[:n, : self.output_dim]


# ----------------------------------------------------------------------------
# Pure-JAX reference for sanity checking (uses unpadded params + explicit bias)
# ----------------------------------------------------------------------------
def mlp_ref(mlp, x):
    if mlp.linear_or_not:
        w, b = mlp.linears[0]
        return x @ w + b
    h = x
    for l in range(mlp.num_layers - 1):
        w, b = mlp.linears[l]
        gamma, beta = mlp.bn_params[l]
        y = h @ w + b
        mean = jnp.mean(y, axis=0, keepdims=True)
        var = jnp.mean((y - mean) ** 2, axis=0, keepdims=True)
        y = (y - mean) / jnp.sqrt(var + _BN_EPS) * gamma + beta
        h = jnp.maximum(y, 0.0)
    w, b = mlp.linears[-1]
    return h @ w + b


if __name__ == "__main__":
    key = jax.random.PRNGKey(0)
    k_param, k_param1, k_x = jax.random.split(key, 3)

    num_layers, input_dim, hidden_dim, output_dim = 3, 16, 32, 8
    batch = 8

    # Multi-layer (fused Linear+BN+ReLU ... Linear) path.
    mlp = MLP(num_layers, input_dim, hidden_dim, output_dim, k_param)
    x = jax.random.normal(k_x, (batch, input_dim), jnp.float32)

    out = jax.block_until_ready(mlp(x))
    ref = mlp_ref(mlp, x)
    assert out.shape == (batch, output_dim)
    assert jnp.allclose(out, ref, atol=1e-4, rtol=1e-4), "mismatch (fused MLP)"

    # Single-layer (pure linear) path.
    mlp1 = MLP(1, input_dim, hidden_dim, output_dim, k_param1)
    out1 = jax.block_until_ready(mlp1(x))
    ref1 = mlp_ref(mlp1, x)
    assert out1.shape == (batch, output_dim)
    assert jnp.allclose(out1, ref1, atol=1e-4, rtol=1e-4), "mismatch (linear)"

    print("KERNEL_OK")
</pallas_src>

<mosaic_0001>
module attributes {stable_mosaic.version = 11 : i64} {
  func.func @_fused_mlp_kernel(%arg0: memref<8x128xf32, #tpu.memory_space<vmem>>, %arg1: memref<128x128xf32, #tpu.memory_space<vmem>>, %arg2: memref<1x128xf32, #tpu.memory_space<vmem>>, %arg3: memref<1x128xf32, #tpu.memory_space<vmem>>, %arg4: memref<128x128xf32, #tpu.memory_space<vmem>>, %arg5: memref<1x128xf32, #tpu.memory_space<vmem>>, %arg6: memref<1x128xf32, #tpu.memory_space<vmem>>, %arg7: memref<128x128xf32, #tpu.memory_space<vmem>>, %arg8: memref<1x128xf32, #tpu.memory_space<vmem>>, %arg9: memref<8x128xf32, #tpu.memory_space<vmem>>) attributes {dimension_semantics = [], scalar_prefetch = 0 : i64, scratch_operands = 0 : i64, tpu.core_type = #tpu.core_type<tc>} {
    %c0 = arith.constant 0 : index
    %c0_0 = arith.constant 0 : index
    %0 = vector.load %arg0[%c0, %c0_0] : memref<8x128xf32, #tpu.memory_space<vmem>>, vector<8x128xf32>
    %c0_1 = arith.constant 0 : index
    %c0_2 = arith.constant 0 : index
    %1 = vector.load %arg1[%c0_1, %c0_2] : memref<128x128xf32, #tpu.memory_space<vmem>>, vector<128x128xf32>
    %cst = arith.constant dense<0.000000e+00> : vector<8x128xf32>
    %2 = tpu.matmul %0, %1, %cst {dimension_numbers = #tpu.dot_dimension_numbers<[1], [0], [0], [1], [0, 0, 1, 1], [], []>} : vector<8x128xf32>, vector<128x128xf32>, vector<8x128xf32> -> vector<8x128xf32>
    %cst_3 = arith.constant dense<0.000000e+00> : vector<128xf32>
    %3 = vector.multi_reduction <add>, %2, %cst_3 [0] : vector<8x128xf32> to vector<128xf32>
    %4 = vector.shape_cast %3 : vector<128xf32> to vector<1x128xf32>
    %cst_4 = arith.constant 1.250000e-01 : f32
    %5 = vector.broadcast %cst_4 : f32 to vector<1x128xf32>
    %6 = arith.mulf %4, %5 : vector<1x128xf32>
    %7 = arith.mulf %2, %2 : vector<8x128xf32>
    %cst_5 = arith.constant dense<0.000000e+00> : vector<128xf32>
    %8 = vector.multi_reduction <add>, %7, %cst_5 [0] : vector<8x128xf32> to vector<128xf32>
    %9 = vector.shape_cast %8 : vector<128xf32> to vector<1x128xf32>
    %cst_6 = arith.constant 1.250000e-01 : f32
    %10 = vector.broadcast %cst_6 : f32 to vector<1x128xf32>
    %11 = arith.mulf %9, %10 : vector<1x128xf32>
    %12 = arith.mulf %6, %6 : vector<1x128xf32>
    %13 = arith.subf %11, %12 : vector<1x128xf32>
    %cst_7 = arith.constant 0.000000e+00 : f32
    %14 = vector.broadcast %cst_7 : f32 to vector<1x128xf32>
    %15 = arith.maximumf %13, %14 : vector<1x128xf32>
    %c0_8 = arith.constant 0 : index
    %c0_9 = arith.constant 0 : index
    %16 = vector.load %arg2[%c0_8, %c0_9] : memref<1x128xf32, #tpu.memory_space<vmem>>, vector<1x128xf32>
    %cst_10 = arith.constant 9.99999974E-6 : f32
    %17 = vector.broadcast %cst_10 : f32 to vector<1x128xf32>
    %18 = arith.addf %15, %17 : vector<1x128xf32>
    %19 = math.rsqrt %18 : vector<1x128xf32>
    %20 = arith.mulf %16, %19 : vector<1x128xf32>
    %21 = vector.broadcast %6 : vector<1x128xf32> to vector<8x128xf32>
    %22 = arith.subf %2, %21 : vector<8x128xf32>
    %23 = vector.broadcast %20 : vector<1x128xf32> to vector<8x128xf32>
    %24 = arith.mulf %22, %23 : vector<8x128xf32>
    %c0_11 = arith.constant 0 : index
    %c0_12 = arith.constant 0 : index
    %25 = vector.load %arg3[%c0_11, %c0_12] : memref<1x128xf32, #tpu.memory_space<vmem>>, vector<1x128xf32>
    %26 = vector.broadcast %25 : vector<1x128xf32> to vector<8x128xf32>
    %27 = arith.addf %24, %26 : vector<8x128xf32>
    %cst_13 = arith.constant 0.000000e+00 : f32
    %28 = vector.broadcast %cst_13 : f32 to vector<8x128xf32>
    %29 = arith.maximumf %27, %28 : vector<8x128xf32>
    %c0_14 = arith.constant 0 : index
    %c0_15 = arith.constant 0 : index
    %30 = vector.load %arg4[%c0_14, %c0_15] : memref<128x128xf32, #tpu.memory_space<vmem>>, vector<128x128xf32>
    %cst_16 = arith.constant dense<0.000000e+00> : vector<8x128xf32>
    %31 = tpu.matmul %29, %30, %cst_16 {dimension_numbers = #tpu.dot_dimension_numbers<[1], [0], [0], [1], [0, 0, 1, 1], [], []>} : vector<8x128xf32>, vector<128x128xf32>, vector<8x128xf32> -> vector<8x128xf32>
    %cst_17 = arith.constant dense<0.000000e+00> : vector<128xf32>
    %32 = vector.multi_reduction <add>, %31, %cst_17 [0] : vector<8x128xf32> to vector<128xf32>
    %33 = vector.shape_cast %32 : vector<128xf32> to vector<1x128xf32>
    %cst_18 = arith.constant 1.250000e-01 : f32
    %34 = vector.broadcast %cst_18 : f32 to vector<1x128xf32>
    %35 = arith.mulf %33, %34 : vector<1x128xf32>
    %36 = arith.mulf %31, %31 : vector<8x128xf32>
    %cst_19 = arith.constant dense<0.000000e+00> : vector<128xf32>
    %37 = vector.multi_reduction <add>, %36, %cst_19 [0] : vector<8x128xf32> to vector<128xf32>
    %38 = vector.shape_cast %37 : vector<128xf32> to vector<1x128xf32>
    %cst_20 = arith.constant 1.250000e-01 : f32
    %39 = vector.broadcast %cst_20 : f32 to vector<1x128xf32>
    %40 = arith.mulf %38, %39 : vector<1x128xf32>
    %41 = arith.mulf %35, %35 : vector<1x128xf32>
    %42 = arith.subf %40, %41 : vector<1x128xf32>
    %cst_21 = arith.constant 0.000000e+00 : f32
    %43 = vector.broadcast %cst_21 : f32 to vector<1x128xf32>
    %44 = arith.maximumf %42, %43 : vector<1x128xf32>
    %c0_22 = arith.constant 0 : index
    %c0_23 = arith.constant 0 : index
    %45 = vector.load %arg5[%c0_22, %c0_23] : memref<1x128xf32, #tpu.memory_space<vmem>>, vector<1x128xf32>
    %cst_24 = arith.constant 9.99999974E-6 : f32
    %46 = vector.broadcast %cst_24 : f32 to vector<1x128xf32>
    %47 = arith.addf %44, %46 : vector<1x128xf32>
    %48 = math.rsqrt %47 : vector<1x128xf32>
    %49 = arith.mulf %45, %48 : vector<1x128xf32>
    %50 = vector.broadcast %35 : vector<1x128xf32> to vector<8x128xf32>
    %51 = arith.subf %31, %50 : vector<8x128xf32>
    %52 = vector.broadcast %49 : vector<1x128xf32> to vector<8x128xf32>
    %53 = arith.mulf %51, %52 : vector<8x128xf32>
    %c0_25 = arith.constant 0 : index
    %c0_26 = arith.constant 0 : index
    %54 = vector.load %arg6[%c0_25, %c0_26] : memref<1x128xf32, #tpu.memory_space<vmem>>, vector<1x128xf32>
    %55 = vector.broadcast %54 : vector<1x128xf32> to vector<8x128xf32>
    %56 = arith.addf %53, %55 : vector<8x128xf32>
    %cst_27 = arith.constant 0.000000e+00 : f32
    %57 = vector.broadcast %cst_27 : f32 to vector<8x128xf32>
    %58 = arith.maximumf %56, %57 : vector<8x128xf32>
    %c0_28 = arith.constant 0 : index
    %c0_29 = arith.constant 0 : index
    %59 = vector.load %arg7[%c0_28, %c0_29] : memref<128x128xf32, #tpu.memory_space<vmem>>, vector<128x128xf32>
    %cst_30 = arith.constant dense<0.000000e+00> : vector<8x128xf32>
    %60 = tpu.matmul %58, %59, %cst_30 {dimension_numbers = #tpu.dot_dimension_numbers<[1], [0], [0], [1], [0, 0, 1, 1], [], []>} : vector<8x128xf32>, vector<128x128xf32>, vector<8x128xf32> -> vector<8x128xf32>
    %c0_31 = arith.constant 0 : index
    %c0_32 = arith.constant 0 : index
    %61 = vector.load %arg8[%c0_31, %c0_32] : memref<1x128xf32, #tpu.memory_space<vmem>>, vector<1x128xf32>
    %62 = vector.broadcast %61 : vector<1x128xf32> to vector<8x128xf32>
    %63 = arith.addf %60, %62 : vector<8x128xf32>
    %c0_33 = arith.constant 0 : index
    %c0_34 = arith.constant 0 : index
    %64 = vector.load %arg9[%c0_33, %c0_34] : memref<8x128xf32, #tpu.memory_space<vmem>>, vector<8x128xf32>
    tpu.vector_store %arg9[%c0_33, %c0_34], %63 {strides = array<i32>} : memref<8x128xf32, #tpu.memory_space<vmem>>, vector<8x128xf32>,
    return
  }
}

</mosaic_0001>

<bundles_post_ra>
// kernel: tpu_custom_call.1
= control target key start
LH: loop header
LB: loop body
LE: loop exit
PB: predicated region body
PF: predicated region fallthrough
CT: control target
= control target key end

     0   :  { %14 = vsyncpa [#allocation3], 0  ;;  %s989_s0 = inlined_call_operand.hbm [shape: f32[8,128], index: 0, kind: input, shape index: {}]   ;;  %s990_s1 = inlined_call_operand.hbm [shape: f32[128,128], index: 1, kind: input, shape index: {}]   ;;  %s991_s2 = inlined_call_operand.vmem [shape: f32[1,128], index: 2, kind: input, shape index: {}]   ;;  %s992_s3 = inlined_call_operand.vmem [shape: f32[1,128], index: 3, kind: input, shape index: {}]   ;;  %s993_s4 = inlined_call_operand.hbm [shape: f32[128,128], index: 4, kind: input, shape index: {}]   ;;  %s994_s5 = inlined_call_operand.vmem [shape: f32[1,128], index: 5, kind: input, shape index: {}]   ;;  %s995_s6 = inlined_call_operand.vmem [shape: f32[1,128], index: 6, kind: input, shape index: {}]   ;;  %s996_s7 = inlined_call_operand.hbm [shape: f32[128,128], index: 7, kind: input, shape index: {}]   ;;  %s997_s8 = inlined_call_operand.vmem [shape: f32[1,128], index: 8, kind: input, shape index: {}]   ;;  %s998_s9 = inlined_call_operand.hbm [shape: f32[8,128], index: 9, kind: output, shape index: {}]  }
   0x1   :  { %15 = vsyncpa [#allocation6], 0 }
   0x2   :  { %16 = vsyncpa [#allocation9], 0 }
   0x3   :  { %17 = vsyncpa [#allocation4], 0  ;;  %s811_s30 = smov [#allocation5]   ;;  %s693_s13 = scalar_lea.hbm %s990_s1, 2048 }
   0x4   :  { %s33_s10 = sshll.u32 %s811_s30, 4  ;;  %p694_p0 = scmp.ne.s32.totalorder %s990_s1, %s693_s13  ;;  %s34_s10 = int_to_ptr.vmem [resolvable:$true] %s33_s10 }
   0x5   :  { %p697_p1 = scmp.lt.u32.totalorder %s693_s13, %s990_s1 }
   0x7   :  { %p699_p2 = pnand %p697_p1, %p694_p0 }
   0x9   :  { %702 = shalt.err (!%p699_p2)
}
   0xa   :  { %s703_s18 = scalar_lea.vmem %s34_s10, 2048  ;;  %p708_p4 = scmp.lt.s32.totalorder %s34_s10, %s34_s10 }
   0xb   :  { %p704_p3 = scmp.ne.s32.totalorder %s34_s10, %s703_s18  ;;  %p709_p5 = scmp.lt.s32.totalorder %s703_s18, %s703_s18 }
   0xd   :  { %p710_p6 = por %p709_p5, %p708_p4 }
   0xf   :  { %p711_p7 = pnand %p710_p6, %p704_p3 }
  0x11   :  { %714 = shalt.err (!%p711_p7)
}
  0x12   :  { %s812_s19 = smov 128   ;;  %s813_s20 = smov 8  }
  0x13   :  { %39 = dma.hbm_to_vmem [thread:$0]  %s990_s1, 2048, %s34_s10, [#allocation6], %s812_s19, %s812_s19, %s813_s20  }
  0x14   :  { %s814_s23 = smov [#allocation2]   ;;  %s815_s25 = smov [#allocation7]  }
  0x15   :  { %s24_s24 = sshll.u32 %s814_s23, 4  ;;  %s49_s26 = sshll.u32 %s815_s25, 4  ;;  %s25_s24 = int_to_ptr.vmem [resolvable:$true] %s24_s24  ;;  %s50_s26 = int_to_ptr.vmem [resolvable:$true] %s49_s26 }
  0x16   :  { %s715_s29 = scalar_lea.hbm %s989_s0, 128 }
  0x17   :  { %p716_p8 = scmp.ne.s32.totalorder %s989_s0, %s715_s29  ;;  %p719_p9 = scmp.lt.u32.totalorder %s715_s29, %s989_s0 }
  0x19   :  { %p721_p10 = pnand %p719_p9, %p716_p8 }
  0x1b   :  { %724 = shalt.err (!%p721_p10)
}
  0x1c   :  { %s725_s1 = scalar_lea.vmem %s25_s24, 128  ;;  %p730_p12 = scmp.lt.s32.totalorder %s25_s24, %s25_s24 }
  0x1d   :  { %p726_p11 = scmp.ne.s32.totalorder %s25_s24, %s725_s1  ;;  %p731_p13 = scmp.lt.s32.totalorder %s725_s1, %s725_s1 }
  0x1f   :  { %p732_p0 = por %p731_p13, %p730_p12 }
  0x21   :  { %p733_p1 = pnand %p732_p0, %p726_p11 }
  0x23   :  { %736 = shalt.err (!%p733_p1)
}
  0x24   :  { %27 = dma.hbm_to_vmem [thread:$0]  %s989_s0, 128, %s25_s24, [#allocation3]  }
  0x25   :  { %s737_s17 = scalar_lea.hbm %s993_s4, 2048 }
  0x26   :  { %p738_p2 = scmp.ne.s32.totalorder %s993_s4, %s737_s17  ;;  %p741_p3 = scmp.lt.u32.totalorder %s737_s17, %s993_s4 }
  0x28   :  { %p743_p4 = pnand %p741_p3, %p738_p2 }
  0x2a   :  { %746 = shalt.err (!%p743_p4)
}
  0x2b   :  { %s747_s25 = scalar_lea.vmem %s50_s26, 2048  ;;  %p752_p6 = scmp.lt.s32.totalorder %s50_s26, %s50_s26 }
  0x2c   :  { %p748_p5 = scmp.ne.s32.totalorder %s50_s26, %s747_s25  ;;  %p753_p7 = scmp.lt.s32.totalorder %s747_s25, %s747_s25 }
  0x2e   :  { %p754_p8 = por %p753_p7, %p752_p6 }
  0x30   :  { %p755_p9 = pnand %p754_p8, %p748_p5 }
  0x32   :  { %758 = shalt.err (!%p755_p9)
}
  0x33   :  { %55 = dma.hbm_to_vmem [thread:$0]  %s993_s4, 2048, %s50_s26, [#allocation6], %s812_s19, %s812_s19, %s813_s20  }
  0x34   :  { %s816_s27 = smov [#allocation8]   ;;  %s759_s11 = scalar_lea.hbm %s996_s7, 2048 }
  0x35   :  { %s65_s28 = sshll.u32 %s816_s27, 4  ;;  %p760_p10 = scmp.ne.s32.totalorder %s996_s7, %s759_s11  ;;  %s66_s28 = int_to_ptr.vmem [resolvable:$true] %s65_s28 }
  0x36   :  { %p763_p11 = scmp.lt.u32.totalorder %s759_s11, %s996_s7 }
  0x38   :  { %p765_p12 = pnand %p763_p11, %p760_p10 }
  0x3a   :  { %768 = shalt.err (!%p765_p12)
}
  0x3b   :  { %s769_s14 = scalar_lea.vmem %s66_s28, 2048  ;;  %p774_p0 = scmp.lt.s32.totalorder %s66_s28, %s66_s28 }
  0x3c   :  { %p770_p13 = scmp.ne.s32.totalorder %s66_s28, %s769_s14  ;;  %p775_p1 = scmp.lt.s32.totalorder %s769_s14, %s769_s14 }
  0x3e   :  { %p776_p2 = por %p775_p1, %p774_p0 }
  0x40   :  { %p777_p3 = pnand %p776_p2, %p770_p13 }
  0x42   :  { %780 = shalt.err (!%p777_p3)
}
  0x43   :  { %71 = dma.hbm_to_vmem [thread:$0]  %s996_s7, 2048, %s66_s28, [#allocation9], %s812_s19, %s812_s19, %s813_s20  }
  0x44   :  { %803 = dma.done.wait [#allocation3], 128  }
  0x45   :  { %804 = vsyncadd [#allocation3], 4294967168 }
  0x46   :  { %805 = dma.done.wait [#allocation6], 4096  }
  0x47   :  { %806 = vsyncadd [#allocation6], 4294963200 }
  0x48   :  { %807 = dma.done.wait [#allocation9], 2048  }
  0x49   :  { %808 = vsyncadd [#allocation9], 4294965248  ;;  %v817_v0 = vmov 0.0|0.0   ;;  %vm818_vm0 = vmmov 0   ;;  %v819_v1 = vmov 0.0   ;;  %v87_v2 = vld [vmem:[#allocation5] sm:$0xff] }
  0x4a   :  { %607 = vmatprep.subr.bf16.mxu0 %v817_v0  ;;  %534 = vmatprep.mubr.msk.f32.mxu0 %vm818_vm0, %v819_v1  ;;  %v88_v3 = vld [vmem:[#allocation5 + $0x8] sm:$0xff]  ;;  %v89_v4 = vld [vmem:[#allocation5 + $0x10] sm:$0xff]  ;;  %v90_v6 = vld [vmem:[#allocation5 + $0x18] sm:$0xff]  ;;  %s820_s22 = smov [#allocation10]  }
  0x4b   :  { %631 = vmatprep.subr.bf16.mxu1 %v817_v0  ;;  %569 = vmatprep.mubr.msk.f32.mxu1 %vm818_vm0, %v819_v1  ;;  %v608_v5 = vpack.c.bf16 %v88_v3, %v87_v2  ;;  %v611_v7 = vpack.c.bf16 %v90_v6, %v89_v4  ;;  %v91_v8 = vld [vmem:[#allocation5 + $0x20] sm:$0xff]  ;;  %v92_v9 = vld [vmem:[#allocation5 + $0x28] sm:$0xff]  ;;  %v93_v11 = vld [vmem:[#allocation5 + $0x30] sm:$0xff] }
  0x4c   :  { %v614_v10 = vpack.c.bf16 %v92_v9, %v91_v8  ;;  %v94_v12 = vld [vmem:[#allocation5 + $0x38] sm:$0xff]  ;;  %v95_v14 = vld [vmem:[#allocation5 + $0x40] sm:$0xff]  ;;  %v96_v15 = vld [vmem:[#allocation5 + $0x48] sm:$0xff]  ;;  %v197_v9 = vlaneseq }
  0x4d   :  { %609 = vmatpush3.bf16.msra.mxu0 %v608_v5  ;;  %v617_v13 = vpack.c.bf16 %v94_v12, %v93_v11  ;;  %v620_v16 = vpack.c.bf16 %v96_v15, %v95_v14  ;;  %v97_v17 = vld [vmem:[#allocation5 + $0x50] sm:$0xff]  ;;  %v98_v18 = vld [vmem:[#allocation5 + $0x58] sm:$0xff]  ;;  %v99_v20 = vld [vmem:[#allocation5 + $0x60] sm:$0xff] }
  0x4e   :  { %610 = vmatprep.subr.bf16.mxu0 %v817_v0  ;;  %v623_v19 = vpack.c.bf16 %v98_v18, %v97_v17  ;;  %v100_v21 = vld [vmem:[#allocation5 + $0x68] sm:$0xff]  ;;  %v101_v23 = vld [vmem:[#allocation5 + $0x70] sm:$0xff]  ;;  %v102_v24 = vld [vmem:[#allocation5 + $0x78] sm:$0xff] }
  0x4f   :  { %v626_v22 = vpack.c.bf16 %v100_v21, %v99_v20  ;;  %v629_v25 = vpack.c.bf16 %v102_v24, %v101_v23  ;;  %v86_v26 = vld [vmem:[#allocation2] sm:$0xff]  ;;  %v212_v27 = vld [vmem:[#allocation7] sm:$0xff]  ;;  %v213_v28 = vld [vmem:[#allocation7 + $0x8] sm:$0xff] }
  0x50   :  { %v632_v29 = vpack.c.bf16 %v213_v28, %v212_v27  ;;  %v214_v30 = vld [vmem:[#allocation7 + $0x10] sm:$0xff]  ;;  %v215_v31 = vld [vmem:[#allocation7 + $0x18] sm:$0xff]  ;;  %v216_v33 = vld [vmem:[#allocation7 + $0x20] sm:$0xff] }
  0x51   :  { %612 = vmatpush3.bf16.msra.mxu0 %v611_v7  ;;  %v635_v32 = vpack.c.bf16 %v215_v31, %v214_v30  ;;  %v217_v34 = vld [vmem:[#allocation7 + $0x28] sm:$0xff]  ;;  %v218_v36 = vld [vmem:[#allocation7 + $0x30] sm:$0xff]  ;;  %v219_v37 = vld [vmem:[#allocation7 + $0x38] sm:$0xff] }
  0x52   :  { %613 = vmatprep.subr.bf16.mxu0 %v817_v0  ;;  %633 = vmatpush3.bf16.msra.mxu1 %v632_v29  ;;  %v638_v35 = vpack.c.bf16 %v217_v34, %v216_v33  ;;  %v641_v38 = vpack.c.bf16 %v219_v37, %v218_v36  ;;  %v220_v39 = vld [vmem:[#allocation7 + $0x40] sm:$0xff]  ;;  %v221_v40 = vld [vmem:[#allocation7 + $0x48] sm:$0xff]  ;;  %v222_v42 = vld [vmem:[#allocation7 + $0x50] sm:$0xff] }
  0x53   :  { %634 = vmatprep.subr.bf16.mxu1 %v817_v0  ;;  %v644_v41 = vpack.c.bf16 %v221_v40, %v220_v39  ;;  %v223_v43 = vld [vmem:[#allocation7 + $0x58] sm:$0xff]  ;;  %v224_v45 = vld [vmem:[#allocation7 + $0x60] sm:$0xff]  ;;  %v225_v46 = vld [vmem:[#allocation7 + $0x68] sm:$0xff] }
  0x54   :  { %v647_v44 = vpack.c.bf16 %v223_v43, %v222_v42  ;;  %v650_v47 = vpack.c.bf16 %v225_v46, %v224_v45  ;;  %v226_v48 = vld [vmem:[#allocation7 + $0x70] sm:$0xff]  ;;  %v227_v49 = vld [vmem:[#allocation7 + $0x78] sm:$0xff]  ;;  %v337_v21 = vld [vmem:[#allocation8] sm:$0xff] }
  0x55   :  { %615 = vmatpush3.bf16.msra.mxu0 %v614_v10  ;;  %v653_v50 = vpack.c.bf16 %v227_v49, %v226_v48  ;;  %v948_v10 = vshrl.u32 %v197_v9, 7  ;;  %v191_v11 = vld [vmem:[%s991_s2] sm:$0x1]  ;;  %v339_v24 = vld [vmem:[#allocation8 + $0x10] sm:$0xff]  ;;  %v341_v27 = vld [vmem:[#allocation8 + $0x20] sm:$0xff] }
  0x56   :  { %616 = vmatprep.subr.bf16.mxu0 %v817_v0  ;;  %636 = vmatpush3.bf16.msra.mxu1 %v635_v32  ;;  %v448_v17 = vld [vmem:[%s992_s3] ss:$0 sm:$0xff]  ;;  %v342_v28 = vld [vmem:[#allocation8 + $0x28] sm:$0xff]  ;;  %v343_v30 = vld [vmem:[#allocation8 + $0x30] sm:$0xff] }
  0x57   :  { %637 = vmatprep.subr.bf16.mxu1 %v817_v0  ;;  %v199_v12 = vsub.s32 0, %v948_v10  ;;  %v662_v29 = vpack.c.bf16 %v342_v28, %v341_v27  ;;  %v344_v31 = vld [vmem:[#allocation8 + $0x38] sm:$0xff]  ;;  %v345_v33 = vld [vmem:[#allocation8 + $0x40] sm:$0xff]  ;;  %v346_v34 = vld [vmem:[#allocation8 + $0x48] sm:$0xff] }
  0x58   :  { %v665_v32 = vpack.c.bf16 %v344_v31, %v343_v30  ;;  %v347_v36 = vld [vmem:[#allocation8 + $0x50] sm:$0xff]  ;;  %v348_v37 = vld [vmem:[#allocation8 + $0x58] sm:$0xff]  ;;  %v349_v39 = vld [vmem:[#allocation8 + $0x60] sm:$0xff] }
  0x59   :  { %618 = vmatpush3.bf16.msra.mxu0 %v617_v13  ;;  %v350_v40 = vld [vmem:[#allocation8 + $0x68] sm:$0xff]  ;;  %v351_v42 = vld [vmem:[#allocation8 + $0x70] sm:$0xff]  ;;  %v352_v43 = vld [vmem:[#allocation8 + $0x78] sm:$0xff] }
  0x5a   :  { %619 = vmatprep.subr.bf16.mxu0 %v817_v0  ;;  %639 = vmatpush3.bf16.msra.mxu1 %v638_v35  ;;  %v668_v35 = vpack.c.bf16 %v346_v34, %v345_v33 }
  0x5b   :  { %640 = vmatprep.subr.bf16.mxu1 %v817_v0 }
  0x5d   :  { %621 = vmatpush3.bf16.msra.mxu0 %v620_v16 }
  0x5e   :  { %622 = vmatprep.subr.bf16.mxu0 %v817_v0  ;;  %642 = vmatpush3.bf16.msra.mxu1 %v641_v38  ;;  %v671_v38 = vpack.c.bf16 %v348_v37, %v347_v36 }
  0x5f   :  { %643 = vmatprep.subr.bf16.mxu1 %v817_v0 }
  0x61   :  { %624 = vmatpush3.bf16.msra.mxu0 %v623_v19 }
  0x62   :  { %625 = vmatprep.subr.bf16.mxu0 %v817_v0  ;;  %645 = vmatpush3.bf16.msra.mxu1 %v644_v41  ;;  %v674_v41 = vpack.c.bf16 %v350_v40, %v349_v39 }
  0x63   :  { %646 = vmatprep.subr.bf16.mxu1 %v817_v0 }
  0x65   :  { %627 = vmatpush3.bf16.msra.mxu0 %v626_v22  ;;  %v338_v22 = vld [vmem:[#allocation8 + $0x8] sm:$0xff] }
  0x66   :  { %628 = vmatprep.subr.bf16.mxu0 %v817_v0  ;;  %648 = vmatpush3.bf16.msra.mxu1 %v647_v44  ;;  %v656_v23 = vpack.c.bf16 %v338_v22, %v337_v21  ;;  %v677_v44 = vpack.c.bf16 %v352_v43, %v351_v42 }
  0x67   :  { %649 = vmatprep.subr.bf16.mxu1 %v817_v0 }
  0x69   :  { %630 = vmatpush3.bf16.msra.mxu0 %v629_v25  ;;  %v340_v25 = vld [vmem:[#allocation8 + $0x18] sm:$0xff] }
  0x6a   :  { %655 = vmatprep.subr.bf16.mxu0 %v817_v0  ;;  %651 = vmatpush3.bf16.msra.mxu1 %v650_v47 }
  0x6b   :  { %652 = vmatprep.subr.bf16.mxu1 %v817_v0 }
  0x6c   :  { %535 = vmatmul.mubr.f32.vlgmr.msra.gmra.mrb[0].mxu0 %v86_v26  ;;  %v659_v26 = vpack.c.bf16 %v340_v25, %v339_v24 }
  0x6d   :  { %604 = vmatprep.mubr.msk.f32.mxu0 %vm818_vm0, %v819_v1  ;;  %657 = vmatpush3.bf16.msra.mxu0 %v656_v23 }
  0x6e   :  { %654 = vmatpush3.bf16.msra.mxu1 %v653_v50  ;;  %658 = vmatprep.subr.bf16.mxu0 %v817_v0 }
  0x71   :  { %660 = vmatpush3.bf16.msra.mxu0 %v659_v26 }
  0x72   :  { %661 = vmatprep.subr.bf16.mxu0 %v817_v0 }
  0x75   :  { %663 = vmatpush3.bf16.msra.mxu0 %v662_v29 }
  0x76   :  { %664 = vmatprep.subr.bf16.mxu0 %v817_v0 }
  0x79   :  { %666 = vmatpush3.bf16.msra.mxu0 %v665_v32 }
  0x7a   :  { %667 = vmatprep.subr.bf16.mxu0 %v817_v0 }
  0x7d   :  { %669 = vmatpush3.bf16.msra.mxu0 %v668_v35 }
  0x7e   :  { %670 = vmatprep.subr.bf16.mxu0 %v817_v0 }
  0x81   :  { %672 = vmatpush3.bf16.msra.mxu0 %v671_v38 }
  0x82   :  { %673 = vmatprep.subr.bf16.mxu0 %v817_v0 }
  0x85   :  { %675 = vmatpush3.bf16.msra.mxu0 %v674_v41 }
  0x86   :  { %676 = vmatprep.subr.bf16.mxu0 %v817_v0 }
  0x89   :  { %678 = vmatpush3.bf16.msra.mxu0 %v677_v44 }
 0x13f   :  { %v169_v51 = vpop.f32.mrb[0].mxu0 }
 0x140   :  { %v173_v52 = vrot.slane %v169_v51, 4  ;;  %v180_v53 = vmul.f32 %v169_v51, %v169_v51  ;;  %v536_v54 = vpop.f32.mrb[1].mxu0 }
 0x142   :  { %v174_v55 = vadd.f32 %v173_v52, %v169_v51  ;;  %v181_v56 = vrot.slane %v180_v53, 4 }
 0x144   :  { %v175_v57 = vrot.slane %v174_v55, 2  ;;  %v182_v58 = vadd.f32 %v181_v56, %v180_v53 }
 0x146   :  { %v176_v59 = vadd.f32 %v175_v57, %v174_v55  ;;  %v183_v60 = vrot.slane %v182_v58, 2 }
 0x148   :  { %v177_v61 = vrot.slane %v176_v59, 1  ;;  %v184_v62 = vadd.f32 %v183_v60, %v182_v58 }
 0x14a   :  { %v178_v63 = vadd.f32 %v177_v61, %v176_v59  ;;  %v185_v1 = vrot.slane %v184_v62, 1 }
 0x14c   :  { %v179_v2 = vmul.f32 0.125, %v178_v63  ;;  %v186_v3 = vadd.f32 %v185_v1, %v184_v62 }
 0x14e   :  { %v187_v4 = vmul.f32 0.125, %v186_v3  ;;  %v188_v5 = vmul.f32 %v179_v2, %v179_v2  ;;  %v195_v15 = vsub.f32 %v169_v51, %v179_v2  ;;  %v316_v2 = vld [vmem:[%s994_s5] sm:$0x1]  ;;  %s437_s5 = sshll.u32 %s820_s22, 4  ;;  %s438_s5 = int_to_ptr.vmem [resolvable:$true] %s437_s5 }
 0x14f   :  { %s781_s23 = scalar_lea.vmem %s438_s5, 128  ;;  %p786_p5 = scmp.lt.s32.totalorder %s438_s5, %s438_s5 }
 0x150   :  { %v189_v6 = vsub.f32 %v187_v4, %v188_v5  ;;  %p782_p4 = scmp.ne.s32.totalorder %s438_s5, %s781_s23  ;;  %p787_p6 = scmp.lt.s32.totalorder %s781_s23, %s781_s23 }
 0x152   :  { %v190_v7 = vmax.f32 %v189_v6, 0.0  ;;  %p788_p7 = por %p787_p6, %p786_p5 }
 0x154   :  { %v192_v8 = vadd.f32 1e-05, %v190_v7  ;;  %v449_v7 = vld [vmem:[%s995_s6] ss:$0 sm:$0xff]  ;;  %p789_p8 = pnand %p788_p7, %p782_p4 }
 0x156   :  { %689 = vrsqrt.f32 %v192_v8 }
 0x160   :  { %v690_v13 = vpop.eup %689 }
 0x161   :  { %v194_v14 = vmul.f32 %v690_v13, %v191_v11  ;;  %v450_v13 = vld [vmem:[%s997_s8] ss:$0 sm:$0xff] }
 0x163   :  { %v200_v16 = vrot.slane %v194_v14, %v199_v12 }
 0x165   :  { %v202_v18 = vmul.f32 %v200_v16, %v195_v15 }
 0x167   :  { %v210_v19 = vadd.f32 %v448_v17, %v202_v18 }
 0x169   :  { %v211_v20 = vmax.f32 %v210_v19, 0.0 }
 0x16b   :  { %570 = vmatmul.mubr.f32.vlgmr.msra.gmra.mrb[0].mxu1 %v211_v20 }
 0x23e   :  { %v294_v45 = vpop.f32.mrb[0].mxu1 }
 0x23f   :  { %v298_v46 = vrot.slane %v294_v45, 4  ;;  %v305_v47 = vmul.f32 %v294_v45, %v294_v45  ;;  %v571_v48 = vpop.f32.mrb[1].mxu1 }
 0x241   :  { %v299_v49 = vadd.f32 %v298_v46, %v294_v45  ;;  %v306_v50 = vrot.slane %v305_v47, 4 }
 0x243   :  { %v300_v51 = vrot.slane %v299_v49, 2  ;;  %v307_v52 = vadd.f32 %v306_v50, %v305_v47 }
 0x245   :  { %v301_v53 = vadd.f32 %v300_v51, %v299_v49  ;;  %v308_v54 = vrot.slane %v307_v52, 2 }
 0x247   :  { %v302_v55 = vrot.slane %v301_v53, 1  ;;  %v309_v56 = vadd.f32 %v308_v54, %v307_v52 }
 0x249   :  { %v303_v57 = vadd.f32 %v302_v55, %v301_v53  ;;  %v310_v58 = vrot.slane %v309_v56, 1 }
 0x24b   :  { %v304_v59 = vmul.f32 0.125, %v303_v57  ;;  %v311_v0 = vadd.f32 %v310_v58, %v309_v56 }
 0x24d   :  { %v312_v60 = vmul.f32 0.125, %v311_v0  ;;  %v313_v61 = vmul.f32 %v304_v59, %v304_v59  ;;  %v320_v5 = vsub.f32 %v294_v45, %v304_v59 }
 0x24f   :  { %v314_v62 = vsub.f32 %v312_v60, %v313_v61 }
 0x251   :  { %v315_v63 = vmax.f32 %v314_v62, 0.0 }
 0x253   :  { %v317_v1 = vadd.f32 1e-05, %v315_v63 }
 0x255   :  { %691 = vrsqrt.f32 %v317_v1 }
 0x25f   :  { %v692_v3 = vpop.eup %691 }
 0x260   :  { %v319_v4 = vmul.f32 %v692_v3, %v316_v2 }
 0x262   :  { %v325_v6 = vrot.slane %v319_v4, %v199_v12 }
 0x264   :  { %v327_v8 = vmul.f32 %v325_v6, %v320_v5 }
 0x266   :  { %v335_v9 = vadd.f32 %v449_v7, %v327_v8 }
 0x268   :  { %v336_v11 = vmax.f32 %v335_v9, 0.0 }
 0x26a   :  { %605 = vmatmul.mubr.f32.vlgmr.msra.gmra.mrb[2].mxu0 %v336_v11 }
 0x33d   :  { %v426_v14 = vpop.f32.mrb[2].mxu0 }
 0x33e   :  { %v427_v15 = vadd.f32 %v450_v13, %v426_v14  ;;  %v606_v16 = vpop.f32.mrb[3].mxu0 }
 0x340   :  { %430 = vst [vmem:[#allocation10] sm:$0xff] %v427_v15 }
 0x341   :  { %792 = shalt.err (!%p789_p8)
}
 0x342   :  { %s793_s0 = scalar_lea.hbm %s998_s9, 128 }
 0x343   :  { %p794_p9 = scmp.ne.s32.totalorder %s998_s9, %s793_s0  ;;  %p797_p10 = scmp.lt.u32.totalorder %s793_s0, %s998_s9 }
 0x345   :  { %p799_p11 = pnand %p797_p10, %p794_p9 }
 0x347   :  { %802 = shalt.err (!%p799_p11)
}
 0x348   :  { %440 = dma.vmem_to_hbm [thread:$0]  %s438_s5, 128, %s998_s9, [#allocation4]  }
 0x349   :  { %809 = dma.done.wait [#allocation4], 128  }
 0x34a   :  { %810 = vsyncadd [#allocation4], 4294967168 }
 0x34b   :  { %444 = vsyncpa [#allocation3], 1 }
 0x34c   :  { %445 = vsyncpa [#allocation6], 1 }
 0x34d   :  { %446 = vsyncpa [#allocation9], 1 }
 0x34e   :  { %447 = vsyncpa [#allocation4], 1 }

</bundles_post_ra>
